<compile_context>
chip_gen: v7x
topology: tpu7x:2x2x1
jax: 0.10.0
libtpu: 0.0.40
codegen_flags: <defaults>
</compile_context>

<pallas_src>
import functools

import jax
import jax.numpy as jnp
from jax.experimental import pallas as pl
from jax.experimental.pallas import tpu as pltpu

_LANE = 128
_SUBLANE = 8


def _round_up(n: int, m: int) -> int:
    return ((n + m - 1) // m) * m


def _target_block_bytes() -> int:
    """Per-generation x-block budget (x + y double-buffered ~= 4x this)."""
    try:
        kind = jax.devices()[0].device_kind.lower()
    except Exception:
        return 2 << 20
    if ("v6" in kind) or ("v7" in kind):
        return 4 << 20   # 16 MiB total with double buffering, < 32 MiB scoped default
    return 2 << 20       # v5e and older: stay well under the 16 MiB scoped default


def _scaling_kernel(factor_ref, x_ref, y_ref):
    # Steady-state body: one broadcasted multiply per vreg (HBM-bandwidth bound).
    y_ref[...] = (x_ref[...] * factor_ref[...]).astype(y_ref.dtype)


@functools.partial(jax.jit, static_argnames=("reverse",))
def scaling_forward(x: jax.Array, scale: jax.Array, reverse: bool = False):
    """x: (B, D), scale: (1, D) -> (y: (B, D), log_det_J: scalar)."""
    B, D = x.shape
    assert scale.shape == (1, D)

    # log|det J| = sum(scale), independent of `reverse` (matches PyTorch).
    log_det = jnp.sum(scale)

    # Precompute exp(+/- scale) once; keep it in x's dtype so the kernel
    # multiply stays in-dtype (no per-element bf16<->f32 converts).
    factor = jnp.exp(-scale) if reverse else jnp.exp(scale)
    factor = factor.astype(x.dtype)

    # ---- Build a lane-dense 2-D view of x (free row-major reshapes only). ----
    folded = False
    if (D % _LANE != 0) and (_LANE % D == 0) and ((B * D) % _LANE == 0):
        # Fold 128//D logical rows per lane-dense row -> full-width stores.
        rep = _LANE // D
        x2 = x.reshape((B * D) // _LANE, _LANE)
        f_row = jnp.tile(factor, (1, rep))
        folded = True
    else:
        # Use D as-is: block last dim == full array dim is legal even when it
        # is not a multiple of 128 (masked stores beat pad+slice HBM passes).
        x2 = x
        f_row = factor

    R, L = x2.shape
    itemsize = x2.dtype.itemsize
    target = _target_block_bytes()
    bytes_per_row = L * itemsize
    wide_rows = _SUBLANE * bytes_per_row > target

    if (not wide_rows) or (L % _LANE != 0):
        # ---- 1-D grid over rows, full feature width per block. ----
        # TODO(synk): extremely wide rows with a non-128-multiple feature dim
        # fall through here with minimal (8, L) blocks and may exceed VMEM.
        max_rows = max(_SUBLANE, (target // bytes_per_row) // _SUBLANE * _SUBLANE)
        if R <= _SUBLANE:
            tile_r = R  # block == full row extent (always legal), grid = 1
        else:
            # Cap tile_r so the grid has >= 2 steps (keeps both v7x TCs busy).
            half = _round_up(pl.cdiv(R, 2), _SUBLANE)
            tile_r = max(_SUBLANE, min(max_rows, half))
        grid = (pl.cdiv(R, tile_r),)
        in_specs = [
            pl.BlockSpec((1, L), lambda i: (0, 0)),        # resident factor row
            pl.BlockSpec((tile_r, L), lambda i: (i, 0)),   # x tile
        ]
        out_spec = pl.BlockSpec((tile_r, L), lambda i: (i, 0))
        dims = ("parallel",)
    else:
        # ---- Very wide rows: 2-D grid, also tile the lane dimension. ----
        tile_r = R if R <= _SUBLANE else _SUBLANE
        tile_l = max(_LANE, (target // (tile_r * itemsize)) // _LANE * _LANE)
        tile_l = min(tile_l, L)
        grid = (pl.cdiv(R, tile_r), pl.cdiv(L, tile_l))
        in_specs = [
            pl.BlockSpec((1, tile_l), lambda i, j: (0, j)),
            pl.BlockSpec((tile_r, tile_l), lambda i, j: (i, j)),
        ]
        out_spec = pl.BlockSpec((tile_r, tile_l), lambda i, j: (i, j))
        dims = ("parallel", "parallel")

    y2 = pl.pallas_call(
        _scaling_kernel,
        out_shape=jax.ShapeDtypeStruct((R, L), x.dtype),
        grid=grid,
        in_specs=in_specs,
        out_specs=out_spec,
        compiler_params=pltpu.CompilerParams(dimension_semantics=dims),
    )(f_row, x2)

    y = y2.reshape(B, D) if folded else y2
    return y, log_det


def _check(B, D, key, dtype=jnp.float32, atol=1e-5):
    kx, ks = jax.random.split(key)
    x = jax.random.normal(kx, (B, D), dtype=jnp.float32).astype(dtype)
    scale = 0.1 * jax.random.normal(ks, (1, D), dtype=jnp.float32)

    y_fwd, ld_fwd = scaling_forward(x, scale, reverse=False)
    y_rev, ld_rev = scaling_forward(x, scale, reverse=True)
    jax.block_until_ready((y_fwd, ld_fwd, y_rev, ld_rev))

    xf = x.astype(jnp.float32)
    ref_fwd = xf * jnp.exp(scale)
    ref_rev = xf * jnp.exp(-scale)
    ref_ld = jnp.sum(scale)
    assert jnp.allclose(y_fwd.astype(jnp.float32), ref_fwd, atol=atol, rtol=atol), (B, D, dtype)
    assert jnp.allclose(y_rev.astype(jnp.float32), ref_rev, atol=atol, rtol=atol), (B, D, dtype)
    assert jnp.allclose(ld_fwd, ref_ld, atol=1e-5, rtol=1e-5)
    assert jnp.allclose(ld_rev, ref_ld, atol=1e-5, rtol=1e-5)


if __name__ == "__main__":
    key = jax.random.PRNGKey(0)
    k0, k1, k2, k3 = jax.random.split(key, 4)

    # Primary demo shape (fold path: D=32 -> 4 logical rows per 128-lane row).
    _check(B=8, D=32, key=k0)
    # Lane-aligned path (D multiple of 128), grid split over 2 steps.
    _check(B=16, D=256, key=k1)
    # Non-aligned D (full-D blocks, masked stores) + partial last row block.
    _check(B=20, D=100, key=k2)
    # bf16 path (multiply stays in bf16).
    _check(B=16, D=256, key=k3, dtype=jnp.bfloat16, atol=3e-2)

    print("KERNEL_OK")
</pallas_src>

<mosaic_0001>
module attributes {stable_mosaic.version = 11 : i64} {
  func.func @_scaling_kernel(%arg0: i32, %arg1: memref<1x128xf32, #tpu.memory_space<vmem>>, %arg2: memref<2x128xf32, #tpu.memory_space<vmem>>, %arg3: memref<2x128xf32, #tpu.memory_space<vmem>>) attributes {dimension_semantics = [#tpu.dimension_semantics<parallel>], iteration_bounds = array<i64: 1>, scalar_prefetch = 0 : i64, scratch_operands = 0 : i64, tpu.core_type = #tpu.core_type<tc>, window_params = [{pipeline_mode = #tpu.pipeline_mode<synchronous>, transform_indices = @transform_0, window_bounds = array<i64: 1, 128>}, {transform_indices = @transform_1, window_bounds = array<i64: 2, 128>}, {transform_indices = @transform_2, window_bounds = array<i64: 2, 128>}]} {
    %c0 = arith.constant 0 : index
    %c0_0 = arith.constant 0 : index
    %0 = vector.load %arg2[%c0, %c0_0] : memref<2x128xf32, #tpu.memory_space<vmem>>, vector<2x128xf32>
    %c0_1 = arith.constant 0 : index
    %c0_2 = arith.constant 0 : index
    %1 = vector.load %arg1[%c0_1, %c0_2] : memref<1x128xf32, #tpu.memory_space<vmem>>, vector<1x128xf32>
    %2 = vector.broadcast %1 : vector<1x128xf32> to vector<2x128xf32>
    %3 = arith.mulf %0, %2 : vector<2x128xf32>
    %c0_3 = arith.constant 0 : index
    %c0_4 = arith.constant 0 : index
    %4 = vector.load %arg3[%c0_3, %c0_4] : memref<2x128xf32, #tpu.memory_space<vmem>>, vector<2x128xf32>
    tpu.vector_store %arg3[%c0_3, %c0_4], %3 {strides = array<i32>} : memref<2x128xf32, #tpu.memory_space<vmem>>, vector<2x128xf32>,
    return
  }
  func.func @transform_0(%arg0: i32) -> (i32, i32) {
    %c0_i32 = arith.constant 0 : i32
    %c0_i32_0 = arith.constant 0 : i32
    %c0_i32_1 = arith.constant 0 : i32
    return %c0_i32, %c0_i32_0 : i32, i32
  }
  func.func @transform_1(%arg0: i32) -> (i32, i32) {
    %c0_i32 = arith.constant 0 : i32
    %c0_i32_0 = arith.constant 0 : i32
    return %arg0, %c0_i32 : i32, i32
  }
  func.func @transform_2(%arg0: i32) -> (i32, i32) {
    %c0_i32 = arith.constant 0 : i32
    %c0_i32_0 = arith.constant 0 : i32
    return %arg0, %c0_i32 : i32, i32
  }
}

</mosaic_0001>

<bundles_post_ra>
// kernel: scaling_forward.1
= control target key start
LH: loop header
LB: loop body
LE: loop exit
PB: predicated region body
PF: predicated region fallthrough
CT: control target
= control target key end

     0   :  { %s50_s0 = inlined_call_operand.vmem [shape: f32[1,128], index: 0, kind: input, shape index: {}]   ;;  %s51_s1 = inlined_call_operand.vmem [shape: f32[2,128], index: 1, kind: input, shape index: {}]   ;;  %s52_s2 = inlined_call_operand.vmem [shape: f32[2,128], index: 2, kind: output, shape index: {}]  }
   0x1   :  { %v11_v0 = vld [vmem:[%s51_s1] sm:$0x3] }
   0x2   :  { %v25_v1 = vld [vmem:[%s50_s0] ss:$0 sm:$0xff] }
   0x3   :  { %v19_v2 = vmul.f32 %v25_v1, %v11_v0 }
   0x5   :  { %20 = vst [vmem:[%s52_s2] sm:$0x3] %v19_v2 }

</bundles_post_ra>
